<compile_context>
chip_gen: v5e
topology: v5e:2x2
jax: 0.10.0
libtpu: 0.0.40
codegen_flags: <defaults>
</compile_context>

<pallas_src>
import functools
import math

import jax
import jax.numpy as jnp
from jax.experimental import pallas as pl
from jax.experimental.pallas import tpu as pltpu


# ---------------------------------------------------------------------------
# Helpers
# ---------------------------------------------------------------------------
def _layer_norm(y, gamma, beta, eps):
    mu = jnp.mean(y, axis=-1, keepdims=True)
    var = jnp.mean(jnp.square(y - mu), axis=-1, keepdims=True)
    return (y - mu) * jax.lax.rsqrt(var + eps) * gamma + beta


# ---------------------------------------------------------------------------
# Fused layer kernel: one grid step == one batch element.
# ---------------------------------------------------------------------------
def _layer_kernel(mask_ref, x_ref, wqkv_ref, bqkv_ref, wo_ref, bo_ref,
                  ln1_g_ref, ln1_b_ref, wg_ref, w1_ref, b1_ref, w2_ref, b2_ref,
                  ln2_g_ref, ln2_b_ref, o_ref, *, nhead, scale, eps):
    x = x_ref[0]                                                     # (S, D)
    s, d = x.shape
    hd = d // nhead

    # ---- combined QKV projection: one wide matmul on the MXU ----
    qkv = jnp.dot(x, wqkv_ref[...],
                  preferred_element_type=jnp.float32) + bqkv_ref[...]  # (S, 3D)

    # key-padding mask: 1.0 = valid key, 0.0 = padded key -> large negative bias on its column
    mask_bias = (mask_ref[0] - 1.0) * 1e9                            # (1, S), broadcasts over queries

    # ---- per-head attention, out-projection accumulated in-register ----
    attn = jnp.zeros((s, d), jnp.float32)
    for h in range(nhead):                                           # small static unroll
        qh = qkv[:, h * hd:(h + 1) * hd]                             # (S, hd)
        kh = qkv[:, d + h * hd:d + (h + 1) * hd]                     # (S, hd)
        vh = qkv[:, 2 * d + h * hd:2 * d + (h + 1) * hd]             # (S, hd)

        # scores[i, j] = <q_i, k_j> * scale (contract on head dim; no explicit transpose)
        scores = jax.lax.dot_general(
            qh, kh, dimension_numbers=(((1,), (1,)), ((), ())),
            preferred_element_type=jnp.float32) * scale + mask_bias  # (S, S)

        m = jnp.max(scores, axis=-1, keepdims=True)
        e = jnp.exp(scores - m)
        p = e / jnp.sum(e, axis=-1, keepdims=True)                   # softmax over keys

        ctx = jnp.dot(p, vh, preferred_element_type=jnp.float32)     # (S, hd)
        # out_proj: concat_heads(ctx) @ Wo^T == sum_h ctx_h @ Wo^T[h*hd:(h+1)*hd, :]
        attn = attn + jnp.dot(ctx, wo_ref[h], preferred_element_type=jnp.float32)
    attn = attn + bo_ref[...]                                        # (1, D) broadcasts

    # ---- residual + LayerNorm1 (post-norm, f32 throughout) ----
    y = _layer_norm(x + attn, ln1_g_ref[...], ln1_b_ref[...], eps)

    # ---- gated FFN: gate is a 1-wide linear -> lane reduction (no N=1 matmul) ----
    gate_logit = jnp.sum(y * wg_ref[...], axis=-1, keepdims=True)    # (S, 1)
    g = 1.0 / (1.0 + jnp.exp(-gate_logit))                           # sigmoid

    h1 = jnp.dot(y, w1_ref[...], preferred_element_type=jnp.float32) + b1_ref[...]
    h1 = jnp.maximum(h1 * g, 0.0)                                    # gate, then ReLU (module order)
    ffo = jnp.dot(h1, w2_ref[...], preferred_element_type=jnp.float32) + b2_ref[...]

    # ---- residual + LayerNorm2 ----
    z = _layer_norm(y + ffo, ln2_g_ref[...], ln2_b_ref[...], eps)
    o_ref[0] = z.astype(o_ref.dtype)


# ---------------------------------------------------------------------------
# One-time parameter layout prep (eliminates per-call transposes).
# ---------------------------------------------------------------------------
def prepare_params(raw, *, nhead, eps=1e-5):
    d = raw["out_proj_weight"].shape[0]
    assert d % nhead == 0
    hd = d // nhead

    w_qkv = jnp.transpose(raw["in_proj_weight"])                      # (D, 3D), col order [q|k|v]
    b_qkv = raw["in_proj_bias"].reshape(1, 3 * d)
    wo = jnp.transpose(raw["out_proj_weight"]).reshape(nhead, hd, d)  # (H, hd, D)

    return dict(
        nhead=nhead, eps=eps,
        w_qkv=w_qkv, b_qkv=b_qkv,
        wo=wo, bo=raw["out_proj_bias"].reshape(1, d),
        ln1_g=raw["ln1_weight"].reshape(1, d), ln1_b=raw["ln1_bias"].reshape(1, d),
        ln2_g=raw["ln2_weight"].reshape(1, d), ln2_b=raw["ln2_bias"].reshape(1, d),
        wg=raw["gate_weight"].reshape(1, d),                          # used as lane reduction
        w1=jnp.transpose(raw["linear1_weight"]),                      # (D, FF)
        b1=raw["linear1_bias"].reshape(1, -1),
        w2=jnp.transpose(raw["linear2_weight"]),                      # (FF, D)
        b2=raw["linear2_bias"].reshape(1, d),
    )


# ---------------------------------------------------------------------------
# Wrapper: full layer forward.
# ---------------------------------------------------------------------------
def cm2_transformer_layer(params, x, key_padding_mask):
    """Forward of CM2TransformerLayer (eval mode).

    x:                (B, S, D) float32
    key_padding_mask: (B, S), True/1 = valid token (the module inverts internally,
                      matching the PyTorch caller convention).
    """
    # TODO(synk): src_mask (additive attn_mask) is not wired in; the demo passes None.
    b, s, d = x.shape
    nhead = params["nhead"]
    hd = d // nhead
    ff = params["w1"].shape[1]
    scale = 1.0 / math.sqrt(hd)

    mask3 = key_padding_mask.astype(jnp.float32).reshape(b, 1, s)

    out = pl.pallas_call(
        functools.partial(_layer_kernel, nhead=nhead, scale=scale, eps=params["eps"]),
        out_shape=jax.ShapeDtypeStruct((b, s, d), x.dtype),
        grid_spec=pltpu.PrefetchScalarGridSpec(
            num_scalar_prefetch=0,
            grid=(b,),
            in_specs=[
                pl.BlockSpec((1, 1, s), lambda bi: (bi, 0, 0)),          # mask
                pl.BlockSpec((1, s, d), lambda bi: (bi, 0, 0)),          # x
                pl.BlockSpec((d, 3 * d), lambda bi: (0, 0)),             # w_qkv (resident)
                pl.BlockSpec((1, 3 * d), lambda bi: (0, 0)),             # b_qkv
                pl.BlockSpec((nhead, hd, d), lambda bi: (0, 0, 0)),      # wo (resident)
                pl.BlockSpec((1, d), lambda bi: (0, 0)),                 # bo
                pl.BlockSpec((1, d), lambda bi: (0, 0)),                 # ln1 gamma
                pl.BlockSpec((1, d), lambda bi: (0, 0)),                 # ln1 beta
                pl.BlockSpec((1, d), lambda bi: (0, 0)),                 # gate weight row
                pl.BlockSpec((d, ff), lambda bi: (0, 0)),                # w1 (resident)
                pl.BlockSpec((1, ff), lambda bi: (0, 0)),                # b1
                pl.BlockSpec((ff, d), lambda bi: (0, 0)),                # w2 (resident)
                pl.BlockSpec((1, d), lambda bi: (0, 0)),                 # b2
                pl.BlockSpec((1, d), lambda bi: (0, 0)),                 # ln2 gamma
                pl.BlockSpec((1, d), lambda bi: (0, 0)),                 # ln2 beta
            ],
            out_specs=pl.BlockSpec((1, s, d), lambda bi: (bi, 0, 0)),
        ),
        compiler_params=pltpu.CompilerParams(
            dimension_semantics=("parallel",)),
    )(mask3, x, params["w_qkv"], params["b_qkv"], params["wo"], params["bo"],
      params["ln1_g"], params["ln1_b"], params["wg"],
      params["w1"], params["b1"], params["w2"], params["b2"],
      params["ln2_g"], params["ln2_b"])

    return out


# ---------------------------------------------------------------------------
# Pure-JAX reference (PyTorch-layout weights) for correctness checking.
# ---------------------------------------------------------------------------
def cm2_transformer_layer_ref(raw, x, key_padding_mask, *, nhead, eps=1e-5):
    b, s, d = x.shape
    hd = d // nhead
    w_in, b_in = raw["in_proj_weight"], raw["in_proj_bias"]
    wq, wk, wv = w_in[:d], w_in[d:2 * d], w_in[2 * d:]
    bq, bk, bv = b_in[:d], b_in[d:2 * d], b_in[2 * d:]

    def heads(t):
        return jnp.transpose(t.reshape(b, s, nhead, hd), (0, 2, 1, 3))

    qh = heads(x @ wq.T + bq)
    kh = heads(x @ wk.T + bk)
    vh = heads(x @ wv.T + bv)
    scores = jnp.einsum("bhqe,bhke->bhqk", qh, kh) / math.sqrt(hd)
    bias = (key_padding_mask.astype(jnp.float32) - 1.0) * 1e9
    scores = scores + bias[:, None, None, :]
    p = jax.nn.softmax(scores, axis=-1)
    ctx = jnp.einsum("bhqk,bhke->bhqe", p, vh)
    ctx = jnp.transpose(ctx, (0, 2, 1, 3)).reshape(b, s, d)
    attn = ctx @ raw["out_proj_weight"].T + raw["out_proj_bias"]

    def ln(t, g, bb):
        mu = t.mean(-1, keepdims=True)
        var = ((t - mu) ** 2).mean(-1, keepdims=True)
        return (t - mu) * jax.lax.rsqrt(var + eps) * g + bb

    y = ln(x + attn, raw["ln1_weight"], raw["ln1_bias"])
    g = jax.nn.sigmoid(y @ raw["gate_weight"].T)
    h = y @ raw["linear1_weight"].T + raw["linear1_bias"]
    h = jnp.maximum(h * g, 0.0)
    ffo = h @ raw["linear2_weight"].T + raw["linear2_bias"]
    return ln(y + ffo, raw["ln2_weight"], raw["ln2_bias"])


if __name__ == "__main__":
    # Small shapes consistent with the module: batch=2, seq=8, d_model=32, nhead=4, ff=64.
    B, S, D, H, FF = 2, 8, 32, 4, 64
    EPS = 1e-5

    key = jax.random.PRNGKey(0)
    ks = jax.random.split(key, 10)

    def uni(k, shape, fan_in):
        bound = 1.0 / math.sqrt(fan_in)
        return jax.random.uniform(k, shape, jnp.float32, -bound, bound)

    raw = {
        "in_proj_weight": uni(ks[0], (3 * D, D), D),
        "in_proj_bias": uni(ks[1], (3 * D,), D),
        "out_proj_weight": uni(ks[2], (D, D), D),
        "out_proj_bias": uni(ks[3], (D,), D),
        "linear1_weight": uni(ks[4], (FF, D), D),
        "linear1_bias": uni(ks[5], (FF,), D),
        "linear2_weight": uni(ks[6], (D, FF), FF),
        "linear2_bias": uni(ks[7], (D,), FF),
        "gate_weight": uni(ks[8], (1, D), D),
        "ln1_weight": jnp.ones((D,), jnp.float32),
        "ln1_bias": jnp.zeros((D,), jnp.float32),
        "ln2_weight": jnp.ones((D,), jnp.float32),
        "ln2_bias": jnp.zeros((D,), jnp.float32),
    }

    x = jax.random.normal(ks[9], (B, S, D), dtype=jnp.float32)
    # key_padding_mask: True = valid (PyTorch caller convention; module inverts internally).
    valid = jnp.ones((B, S), dtype=jnp.bool_).at[1, S - 2:].set(False)

    params = prepare_params(raw, nhead=H, eps=EPS)
    out = cm2_transformer_layer(params, x, valid)
    out = jax.block_until_ready(out)

    with jax.default_matmul_precision("highest"):
        ref = cm2_transformer_layer_ref(raw, x, valid, nhead=H, eps=EPS)
    ref = jax.block_until_ready(ref)

    assert out.shape == (B, S, D)
    max_err = float(jnp.max(jnp.abs(out - ref)))
    assert jnp.allclose(out, ref, atol=2e-3, rtol=2e-3), f"max abs err = {max_err}"

    print("KERNEL_OK")
</pallas_src>

<mosaic_0001>
module attributes {stable_mosaic.version = 11 : i64} {
  func.func @_layer_kernel(%arg0: i32, %arg1: memref<1x1x8xf32, #tpu.memory_space<vmem>>, %arg2: memref<1x8x32xf32, #tpu.memory_space<vmem>>, %arg3: memref<32x96xf32, #tpu.memory_space<vmem>>, %arg4: memref<1x96xf32, #tpu.memory_space<vmem>>, %arg5: memref<4x8x32xf32, #tpu.memory_space<vmem>>, %arg6: memref<1x32xf32, #tpu.memory_space<vmem>>, %arg7: memref<1x32xf32, #tpu.memory_space<vmem>>, %arg8: memref<1x32xf32, #tpu.memory_space<vmem>>, %arg9: memref<1x32xf32, #tpu.memory_space<vmem>>, %arg10: memref<32x64xf32, #tpu.memory_space<vmem>>, %arg11: memref<1x64xf32, #tpu.memory_space<vmem>>, %arg12: memref<64x32xf32, #tpu.memory_space<vmem>>, %arg13: memref<1x32xf32, #tpu.memory_space<vmem>>, %arg14: memref<1x32xf32, #tpu.memory_space<vmem>>, %arg15: memref<1x32xf32, #tpu.memory_space<vmem>>, %arg16: memref<1x8x32xf32, #tpu.memory_space<vmem>>) attributes {dimension_semantics = [#tpu.dimension_semantics<parallel>], iteration_bounds = array<i64: 2>, scalar_prefetch = 0 : i64, scratch_operands = 0 : i64, tpu.core_type = #tpu.core_type<tc>, window_params = [{transform_indices = @transform_0, window_bounds = array<i64: 1, 1, 8>}, {transform_indices = @transform_1, window_bounds = array<i64: 1, 8, 32>}, {pipeline_mode = #tpu.pipeline_mode<synchronous>, transform_indices = @transform_2, window_bounds = array<i64: 32, 96>}, {pipeline_mode = #tpu.pipeline_mode<synchronous>, transform_indices = @transform_3, window_bounds = array<i64: 1, 96>}, {pipeline_mode = #tpu.pipeline_mode<synchronous>, transform_indices = @transform_4, window_bounds = array<i64: 4, 8, 32>}, {pipeline_mode = #tpu.pipeline_mode<synchronous>, transform_indices = @transform_5, window_bounds = array<i64: 1, 32>}, {pipeline_mode = #tpu.pipeline_mode<synchronous>, transform_indices = @transform_6, window_bounds = array<i64: 1, 32>}, {pipeline_mode = #tpu.pipeline_mode<synchronous>, transform_indices = @transform_7, window_bounds = array<i64: 1, 32>}, {pipeline_mode = #tpu.pipeline_mode<synchronous>, transform_indices = @transform_8, window_bounds = array<i64: 1, 32>}, {pipeline_mode = #tpu.pipeline_mode<synchronous>, transform_indices = @transform_9, window_bounds = array<i64: 32, 64>}, {pipeline_mode = #tpu.pipeline_mode<synchronous>, transform_indices = @transform_10, window_bounds = array<i64: 1, 64>}, {pipeline_mode = #tpu.pipeline_mode<synchronous>, transform_indices = @transform_11, window_bounds = array<i64: 64, 32>}, {pipeline_mode = #tpu.pipeline_mode<synchronous>, transform_indices = @transform_12, window_bounds = array<i64: 1, 32>}, {pipeline_mode = #tpu.pipeline_mode<synchronous>, transform_indices = @transform_13, window_bounds = array<i64: 1, 32>}, {pipeline_mode = #tpu.pipeline_mode<synchronous>, transform_indices = @transform_14, window_bounds = array<i64: 1, 32>}, {transform_indices = @transform_15, window_bounds = array<i64: 1, 8, 32>}]} {
    %c0 = arith.constant 0 : index
    %c0_0 = arith.constant 0 : index
    %c0_1 = arith.constant 0 : index
    %0 = vector.load %arg2[%c0, %c0_0, %c0_1] : memref<1x8x32xf32, #tpu.memory_space<vmem>>, vector<1x8x32xf32>
    %1 = vector.shape_cast %0 : vector<1x8x32xf32> to vector<8x32xf32>
    %c0_2 = arith.constant 0 : index
    %c0_3 = arith.constant 0 : index
    %2 = vector.load %arg3[%c0_2, %c0_3] : memref<32x96xf32, #tpu.memory_space<vmem>>, vector<32x96xf32>
    %cst = arith.constant dense<0.000000e+00> : vector<8x96xf32>
    %3 = tpu.matmul %1, %2, %cst {dimension_numbers = #tpu.dot_dimension_numbers<[1], [0], [0], [1], [0, 0, 1, 1], [], []>} : vector<8x32xf32>, vector<32x96xf32>, vector<8x96xf32> -> vector<8x96xf32>
    %c0_4 = arith.constant 0 : index
    %c0_5 = arith.constant 0 : index
    %4 = vector.load %arg4[%c0_4, %c0_5] : memref<1x96xf32, #tpu.memory_space<vmem>>, vector<1x96xf32>
    %5 = vector.broadcast %4 : vector<1x96xf32> to vector<8x96xf32>
    %6 = arith.addf %3, %5 : vector<8x96xf32>
    %c0_6 = arith.constant 0 : index
    %c0_7 = arith.constant 0 : index
    %c0_8 = arith.constant 0 : index
    %7 = vector.load %arg1[%c0_6, %c0_7, %c0_8] : memref<1x1x8xf32, #tpu.memory_space<vmem>>, vector<1x1x8xf32>
    %8 = vector.shape_cast %7 : vector<1x1x8xf32> to vector<1x8xf32>
    %cst_9 = arith.constant 1.000000e+00 : f32
    %9 = vector.broadcast %cst_9 : f32 to vector<1x8xf32>
    %10 = arith.subf %8, %9 : vector<1x8xf32>
    %cst_10 = arith.constant 1.000000e+09 : f32
    %11 = vector.broadcast %cst_10 : f32 to vector<1x8xf32>
    %12 = arith.mulf %10, %11 : vector<1x8xf32>
    %cst_11 = arith.constant 0.000000e+00 : f32
    %13 = vector.broadcast %cst_11 : f32 to vector<8x32xf32>
    %14 = vector.extract_strided_slice %6 {offsets = [0, 0], sizes = [8, 8], strides = [1, 1]} : vector<8x96xf32> to vector<8x8xf32>
    %15 = vector.extract_strided_slice %6 {offsets = [0, 32], sizes = [8, 8], strides = [1, 1]} : vector<8x96xf32> to vector<8x8xf32>
    %16 = vector.extract_strided_slice %6 {offsets = [0, 64], sizes = [8, 8], strides = [1, 1]} : vector<8x96xf32> to vector<8x8xf32>
    %cst_12 = arith.constant dense<0.000000e+00> : vector<8x8xf32>
    %17 = tpu.matmul %14, %15, %cst_12 {dimension_numbers = #tpu.dot_dimension_numbers<[1], [1], [0], [0], [0, 0, 1, 0], [], []>} : vector<8x8xf32>, vector<8x8xf32>, vector<8x8xf32> -> vector<8x8xf32>
    %cst_13 = arith.constant 0.353553385 : f32
    %18 = vector.broadcast %cst_13 : f32 to vector<8x8xf32>
    %19 = arith.mulf %17, %18 : vector<8x8xf32>
    %20 = vector.broadcast %12 : vector<1x8xf32> to vector<8x8xf32>
    %21 = arith.addf %19, %20 : vector<8x8xf32>
    %cst_14 = arith.constant dense<0xFF800000> : vector<8xf32>
    %22 = vector.multi_reduction <maximumf>, %21, %cst_14 [1] : vector<8x8xf32> to vector<8xf32>
    %23 = vector.shape_cast %22 : vector<8xf32> to vector<8x1xf32>
    %24 = vector.broadcast %23 : vector<8x1xf32> to vector<8x8xf32>
    %25 = arith.subf %21, %24 : vector<8x8xf32>
    %26 = math.exp %25 : vector<8x8xf32>
    %cst_15 = arith.constant dense<0.000000e+00> : vector<8xf32>
    %27 = vector.multi_reduction <add>, %26, %cst_15 [1] : vector<8x8xf32> to vector<8xf32>
    %28 = vector.shape_cast %27 : vector<8xf32> to vector<8x1xf32>
    %29 = vector.broadcast %28 : vector<8x1xf32> to vector<8x8xf32>
    %30 = arith.divf %26, %29 : vector<8x8xf32>
    %cst_16 = arith.constant dense<0.000000e+00> : vector<8x8xf32>
    %31 = tpu.matmul %30, %16, %cst_16 {dimension_numbers = #tpu.dot_dimension_numbers<[1], [0], [0], [1], [0, 0, 1, 1], [], []>} : vector<8x8xf32>, vector<8x8xf32>, vector<8x8xf32> -> vector<8x8xf32>
    %c0_17 = arith.constant 0 : index
    %c0_18 = arith.constant 0 : index
    %c0_19 = arith.constant 0 : index
    %32 = vector.load %arg5[%c0_17, %c0_18, %c0_19] : memref<4x8x32xf32, #tpu.memory_space<vmem>>, vector<1x8x32xf32>
    %33 = vector.shape_cast %32 : vector<1x8x32xf32> to vector<8x32xf32>
    %cst_20 = arith.constant dense<0.000000e+00> : vector<8x32xf32>
    %34 = tpu.matmul %31, %33, %cst_20 {dimension_numbers = #tpu.dot_dimension_numbers<[1], [0], [0], [1], [0, 0, 1, 1], [], []>} : vector<8x8xf32>, vector<8x32xf32>, vector<8x32xf32> -> vector<8x32xf32>
    %35 = arith.addf %13, %34 : vector<8x32xf32>
    %36 = vector.extract_strided_slice %6 {offsets = [0, 8], sizes = [8, 8], strides = [1, 1]} : vector<8x96xf32> to vector<8x8xf32>
    %37 = vector.extract_strided_slice %6 {offsets = [0, 40], sizes = [8, 8], strides = [1, 1]} : vector<8x96xf32> to vector<8x8xf32>
    %38 = vector.extract_strided_slice %6 {offsets = [0, 72], sizes = [8, 8], strides = [1, 1]} : vector<8x96xf32> to vector<8x8xf32>
    %cst_21 = arith.constant dense<0.000000e+00> : vector<8x8xf32>
    %39 = tpu.matmul %36, %37, %cst_21 {dimension_numbers = #tpu.dot_dimension_numbers<[1], [1], [0], [0], [0, 0, 1, 0], [], []>} : vector<8x8xf32>, vector<8x8xf32>, vector<8x8xf32> -> vector<8x8xf32>
    %cst_22 = arith.constant 0.353553385 : f32
    %40 = vector.broadcast %cst_22 : f32 to vector<8x8xf32>
    %41 = arith.mulf %39, %40 : vector<8x8xf32>
    %42 = vector.broadcast %12 : vector<1x8xf32> to vector<8x8xf32>
    %43 = arith.addf %41, %42 : vector<8x8xf32>
    %cst_23 = arith.constant dense<0xFF800000> : vector<8xf32>
    %44 = vector.multi_reduction <maximumf>, %43, %cst_23 [1] : vector<8x8xf32> to vector<8xf32>
    %45 = vector.shape_cast %44 : vector<8xf32> to vector<8x1xf32>
    %46 = vector.broadcast %45 : vector<8x1xf32> to vector<8x8xf32>
    %47 = arith.subf %43, %46 : vector<8x8xf32>
    %48 = math.exp %47 : vector<8x8xf32>
    %cst_24 = arith.constant dense<0.000000e+00> : vector<8xf32>
    %49 = vector.multi_reduction <add>, %48, %cst_24 [1] : vector<8x8xf32> to vector<8xf32>
    %50 = vector.shape_cast %49 : vector<8xf32> to vector<8x1xf32>
    %51 = vector.broadcast %50 : vector<8x1xf32> to vector<8x8xf32>
    %52 = arith.divf %48, %51 : vector<8x8xf32>
    %cst_25 = arith.constant dense<0.000000e+00> : vector<8x8xf32>
    %53 = tpu.matmul %52, %38, %cst_25 {dimension_numbers = #tpu.dot_dimension_numbers<[1], [0], [0], [1], [0, 0, 1, 1], [], []>} : vector<8x8xf32>, vector<8x8xf32>, vector<8x8xf32> -> vector<8x8xf32>
    %c1 = arith.constant 1 : index
    %c0_26 = arith.constant 0 : index
    %c0_27 = arith.constant 0 : index
    %54 = vector.load %arg5[%c1, %c0_26, %c0_27] : memref<4x8x32xf32, #tpu.memory_space<vmem>>, vector<1x8x32xf32>
    %55 = vector.shape_cast %54 : vector<1x8x32xf32> to vector<8x32xf32>
    %cst_28 = arith.constant dense<0.000000e+00> : vector<8x32xf32>
    %56 = tpu.matmul %53, %55, %cst_28 {dimension_numbers = #tpu.dot_dimension_numbers<[1], [0], [0], [1], [0, 0, 1, 1], [], []>} : vector<8x8xf32>, vector<8x32xf32>, vector<8x32xf32> -> vector<8x32xf32>
    %57 = arith.addf %35, %56 : vector<8x32xf32>
    %58 = vector.extract_strided_slice %6 {offsets = [0, 16], sizes = [8, 8], strides = [1, 1]} : vector<8x96xf32> to vector<8x8xf32>
    %59 = vector.extract_strided_slice %6 {offsets = [0, 48], sizes = [8, 8], strides = [1, 1]} : vector<8x96xf32> to vector<8x8xf32>
    %60 = vector.extract_strided_slice %6 {offsets = [0, 80], sizes = [8, 8], strides = [1, 1]} : vector<8x96xf32> to vector<8x8xf32>
    %cst_29 = arith.constant dense<0.000000e+00> : vector<8x8xf32>
    %61 = tpu.matmul %58, %59, %cst_29 {dimension_numbers = #tpu.dot_dimension_numbers<[1], [1], [0], [0], [0, 0, 1, 0], [], []>} : vector<8x8xf32>, vector<8x8xf32>, vector<8x8xf32> -> vector<8x8xf32>
    %cst_30 = arith.constant 0.353553385 : f32
    %62 = vector.broadcast %cst_30 : f32 to vector<8x8xf32>
    %63 = arith.mulf %61, %62 : vector<8x8xf32>
    %64 = vector.broadcast %12 : vector<1x8xf32> to vector<8x8xf32>
    %65 = arith.addf %63, %64 : vector<8x8xf32>
    %cst_31 = arith.constant dense<0xFF800000> : vector<8xf32>
    %66 = vector.multi_reduction <maximumf>, %65, %cst_31 [1] : vector<8x8xf32> to vector<8xf32>
    %67 = vector.shape_cast %66 : vector<8xf32> to vector<8x1xf32>
    %68 = vector.broadcast %67 : vector<8x1xf32> to vector<8x8xf32>
    %69 = arith.subf %65, %68 : vector<8x8xf32>
    %70 = math.exp %69 : vector<8x8xf32>
    %cst_32 = arith.constant dense<0.000000e+00> : vector<8xf32>
    %71 = vector.multi_reduction <add>, %70, %cst_32 [1] : vector<8x8xf32> to vector<8xf32>
    %72 = vector.shape_cast %71 : vector<8xf32> to vector<8x1xf32>
    %73 = vector.broadcast %72 : vector<8x1xf32> to vector<8x8xf32>
    %74 = arith.divf %70, %73 : vector<8x8xf32>
    %cst_33 = arith.constant dense<0.000000e+00> : vector<8x8xf32>
    %75 = tpu.matmul %74, %60, %cst_33 {dimension_numbers = #tpu.dot_dimension_numbers<[1], [0], [0], [1], [0, 0, 1, 1], [], []>} : vector<8x8xf32>, vector<8x8xf32>, vector<8x8xf32> -> vector<8x8xf32>
    %c2 = arith.constant 2 : index
    %c0_34 = arith.constant 0 : index
    %c0_35 = arith.constant 0 : index
    %76 = vector.load %arg5[%c2, %c0_34, %c0_35] : memref<4x8x32xf32, #tpu.memory_space<vmem>>, vector<1x8x32xf32>
    %77 = vector.shape_cast %76 : vector<1x8x32xf32> to vector<8x32xf32>
    %cst_36 = arith.constant dense<0.000000e+00> : vector<8x32xf32>
    %78 = tpu.matmul %75, %77, %cst_36 {dimension_numbers = #tpu.dot_dimension_numbers<[1], [0], [0], [1], [0, 0, 1, 1], [], []>} : vector<8x8xf32>, vector<8x32xf32>, vector<8x32xf32> -> vector<8x32xf32>
    %79 = arith.addf %57, %78 : vector<8x32xf32>
    %80 = vector.extract_strided_slice %6 {offsets = [0, 24], sizes = [8, 8], strides = [1, 1]} : vector<8x96xf32> to vector<8x8xf32>
    %81 = vector.extract_strided_slice %6 {offsets = [0, 56], sizes = [8, 8], strides = [1, 1]} : vector<8x96xf32> to vector<8x8xf32>
    %82 = vector.extract_strided_slice %6 {offsets = [0, 88], sizes = [8, 8], strides = [1, 1]} : vector<8x96xf32> to vector<8x8xf32>
    %cst_37 = arith.constant dense<0.000000e+00> : vector<8x8xf32>
    %83 = tpu.matmul %80, %81, %cst_37 {dimension_numbers = #tpu.dot_dimension_numbers<[1], [1], [0], [0], [0, 0, 1, 0], [], []>} : vector<8x8xf32>, vector<8x8xf32>, vector<8x8xf32> -> vector<8x8xf32>
    %cst_38 = arith.constant 0.353553385 : f32
    %84 = vector.broadcast %cst_38 : f32 to vector<8x8xf32>
    %85 = arith.mulf %83, %84 : vector<8x8xf32>
    %86 = vector.broadcast %12 : vector<1x8xf32> to vector<8x8xf32>
    %87 = arith.addf %85, %86 : vector<8x8xf32>
    %cst_39 = arith.constant dense<0xFF800000> : vector<8xf32>
    %88 = vector.multi_reduction <maximumf>, %87, %cst_39 [1] : vector<8x8xf32> to vector<8xf32>
    %89 = vector.shape_cast %88 : vector<8xf32> to vector<8x1xf32>
    %90 = vector.broadcast %89 : vector<8x1xf32> to vector<8x8xf32>
    %91 = arith.subf %87, %90 : vector<8x8xf32>
    %92 = math.exp %91 : vector<8x8xf32>
    %cst_40 = arith.constant dense<0.000000e+00> : vector<8xf32>
    %93 = vector.multi_reduction <add>, %92, %cst_40 [1] : vector<8x8xf32> to vector<8xf32>
    %94 = vector.shape_cast %93 : vector<8xf32> to vector<8x1xf32>
    %95 = vector.broadcast %94 : vector<8x1xf32> to vector<8x8xf32>
    %96 = arith.divf %92, %95 : vector<8x8xf32>
    %cst_41 = arith.constant dense<0.000000e+00> : vector<8x8xf32>
    %97 = tpu.matmul %96, %82, %cst_41 {dimension_numbers = #tpu.dot_dimension_numbers<[1], [0], [0], [1], [0, 0, 1, 1], [], []>} : vector<8x8xf32>, vector<8x8xf32>, vector<8x8xf32> -> vector<8x8xf32>
    %c3 = arith.constant 3 : index
    %c0_42 = arith.constant 0 : index
    %c0_43 = arith.constant 0 : index
    %98 = vector.load %arg5[%c3, %c0_42, %c0_43] : memref<4x8x32xf32, #tpu.memory_space<vmem>>, vector<1x8x32xf32>
    %99 = vector.shape_cast %98 : vector<1x8x32xf32> to vector<8x32xf32>
    %cst_44 = arith.constant dense<0.000000e+00> : vector<8x32xf32>
    %100 = tpu.matmul %97, %99, %cst_44 {dimension_numbers = #tpu.dot_dimension_numbers<[1], [0], [0], [1], [0, 0, 1, 1], [], []>} : vector<8x8xf32>, vector<8x32xf32>, vector<8x32xf32> -> vector<8x32xf32>
    %101 = arith.addf %79, %100 : vector<8x32xf32>
    %c0_45 = arith.constant 0 : index
    %c0_46 = arith.constant 0 : index
    %102 = vector.load %arg6[%c0_45, %c0_46] : memref<1x32xf32, #tpu.memory_space<vmem>>, vector<1x32xf32>
    %103 = vector.broadcast %102 : vector<1x32xf32> to vector<8x32xf32>
    %104 = arith.addf %101, %103 : vector<8x32xf32>
    %105 = arith.addf %1, %104 : vector<8x32xf32>
    %c0_47 = arith.constant 0 : index
    %c0_48 = arith.constant 0 : index
    %106 = vector.load %arg7[%c0_47, %c0_48] : memref<1x32xf32, #tpu.memory_space<vmem>>, vector<1x32xf32>
    %c0_49 = arith.constant 0 : index
    %c0_50 = arith.constant 0 : index
    %107 = vector.load %arg8[%c0_49, %c0_50] : memref<1x32xf32, #tpu.memory_space<vmem>>, vector<1x32xf32>
    %cst_51 = arith.constant dense<0.000000e+00> : vector<8xf32>
    %108 = vector.multi_reduction <add>, %105, %cst_51 [1] : vector<8x32xf32> to vector<8xf32>
    %109 = vector.shape_cast %108 : vector<8xf32> to vector<8x1xf32>
    %cst_52 = arith.constant 3.200000e+01 : f32
    %110 = vector.broadcast %cst_52 : f32 to vector<8x1xf32>
    %111 = arith.divf %109, %110 : vector<8x1xf32>
    %112 = vector.broadcast %111 : vector<8x1xf32> to vector<8x32xf32>
    %113 = arith.subf %105, %112 : vector<8x32xf32>
    %114 = arith.mulf %113, %113 : vector<8x32xf32>
    %cst_53 = arith.constant dense<0.000000e+00> : vector<8xf32>
    %115 = vector.multi_reduction <add>, %114, %cst_53 [1] : vector<8x32xf32> to vector<8xf32>
    %116 = vector.shape_cast %115 : vector<8xf32> to vector<8x1xf32>
    %cst_54 = arith.constant 3.200000e+01 : f32
    %117 = vector.broadcast %cst_54 : f32 to vector<8x1xf32>
    %118 = arith.divf %116, %117 : vector<8x1xf32>
    %119 = vector.broadcast %111 : vector<8x1xf32> to vector<8x32xf32>
    %120 = arith.subf %105, %119 : vector<8x32xf32>
    %cst_55 = arith.constant 9.99999974E-6 : f32
    %121 = vector.broadcast %cst_55 : f32 to vector<8x1xf32>
    %122 = arith.addf %118, %121 : vector<8x1xf32>
    %123 = math.rsqrt %122 : vector<8x1xf32>
    %124 = vector.broadcast %123 : vector<8x1xf32> to vector<8x32xf32>
    %125 = arith.mulf %120, %124 : vector<8x32xf32>
    %126 = vector.broadcast %106 : vector<1x32xf32> to vector<8x32xf32>
    %127 = arith.mulf %125, %126 : vector<8x32xf32>
    %128 = vector.broadcast %107 : vector<1x32xf32> to vector<8x32xf32>
    %129 = arith.addf %127, %128 : vector<8x32xf32>
    %c0_56 = arith.constant 0 : index
    %c0_57 = arith.constant 0 : index
    %130 = vector.load %arg9[%c0_56, %c0_57] : memref<1x32xf32, #tpu.memory_space<vmem>>, vector<1x32xf32>
    %131 = vector.broadcast %130 : vector<1x32xf32> to vector<8x32xf32>
    %132 = arith.mulf %129, %131 : vector<8x32xf32>
    %cst_58 = arith.constant dense<0.000000e+00> : vector<8xf32>
    %133 = vector.multi_reduction <add>, %132, %cst_58 [1] : vector<8x32xf32> to vector<8xf32>
    %134 = vector.shape_cast %133 : vector<8xf32> to vector<8x1xf32>
    %cst_59 = arith.constant 0.000000e+00 : f32
    %135 = vector.broadcast %cst_59 : f32 to vector<8x1xf32>
    %136 = arith.subf %135, %134 : vector<8x1xf32>
    %137 = math.exp %136 : vector<8x1xf32>
    %cst_60 = arith.constant 1.000000e+00 : f32
    %138 = vector.broadcast %cst_60 : f32 to vector<8x1xf32>
    %139 = arith.addf %138, %137 : vector<8x1xf32>
    %cst_61 = arith.constant 1.000000e+00 : f32
    %140 = vector.broadcast %cst_61 : f32 to vector<8x1xf32>
    %141 = arith.divf %140, %139 : vector<8x1xf32>
    %c0_62 = arith.constant 0 : index
    %c0_63 = arith.constant 0 : index
    %142 = vector.load %arg10[%c0_62, %c0_63] : memref<32x64xf32, #tpu.memory_space<vmem>>, vector<32x64xf32>
    %cst_64 = arith.constant dense<0.000000e+00> : vector<8x64xf32>
    %143 = tpu.matmul %129, %142, %cst_64 {dimension_numbers = #tpu.dot_dimension_numbers<[1], [0], [0], [1], [0, 0, 1, 1], [], []>} : vector<8x32xf32>, vector<32x64xf32>, vector<8x64xf32> -> vector<8x64xf32>
    %c0_65 = arith.constant 0 : index
    %c0_66 = arith.constant 0 : index
    %144 = vector.load %arg11[%c0_65, %c0_66] : memref<1x64xf32, #tpu.memory_space<vmem>>, vector<1x64xf32>
    %145 = vector.broadcast %144 : vector<1x64xf32> to vector<8x64xf32>
    %146 = arith.addf %143, %145 : vector<8x64xf32>
    %147 = vector.broadcast %141 : vector<8x1xf32> to vector<8x64xf32>
    %148 = arith.mulf %146, %147 : vector<8x64xf32>
    %cst_67 = arith.constant 0.000000e+00 : f32
    %149 = vector.broadcast %cst_67 : f32 to vector<8x64xf32>
    %150 = arith.maximumf %148, %149 : vector<8x64xf32>
    %c0_68 = arith.constant 0 : index
    %c0_69 = arith.constant 0 : index
    %151 = vector.load %arg12[%c0_68, %c0_69] : memref<64x32xf32, #tpu.memory_space<vmem>>, vector<64x32xf32>
    %cst_70 = arith.constant dense<0.000000e+00> : vector<8x32xf32>
    %152 = tpu.matmul %150, %151, %cst_70 {dimension_numbers = #tpu.dot_dimension_numbers<[1], [0], [0], [1], [0, 0, 1, 1], [], []>} : vector<8x64xf32>, vector<64x32xf32>, vector<8x32xf32> -> vector<8x32xf32>
    %c0_71 = arith.constant 0 : index
    %c0_72 = arith.constant 0 : index
    %153 = vector.load %arg13[%c0_71, %c0_72] : memref<1x32xf32, #tpu.memory_space<vmem>>, vector<1x32xf32>
    %154 = vector.broadcast %153 : vector<1x32xf32> to vector<8x32xf32>
    %155 = arith.addf %152, %154 : vector<8x32xf32>
    %156 = arith.addf %129, %155 : vector<8x32xf32>
    %c0_73 = arith.constant 0 : index
    %c0_74 = arith.constant 0 : index
    %157 = vector.load %arg14[%c0_73, %c0_74] : memref<1x32xf32, #tpu.memory_space<vmem>>, vector<1x32xf32>
    %c0_75 = arith.constant 0 : index
    %c0_76 = arith.constant 0 : index
    %158 = vector.load %arg15[%c0_75, %c0_76] : memref<1x32xf32, #tpu.memory_space<vmem>>, vector<1x32xf32>
    %cst_77 = arith.constant dense<0.000000e+00> : vector<8xf32>
    %159 = vector.multi_reduction <add>, %156, %cst_77 [1] : vector<8x32xf32> to vector<8xf32>
    %160 = vector.shape_cast %159 : vector<8xf32> to vector<8x1xf32>
    %cst_78 = arith.constant 3.200000e+01 : f32
    %161 = vector.broadcast %cst_78 : f32 to vector<8x1xf32>
    %162 = arith.divf %160, %161 : vector<8x1xf32>
    %163 = vector.broadcast %162 : vector<8x1xf32> to vector<8x32xf32>
    %164 = arith.subf %156, %163 : vector<8x32xf32>
    %165 = arith.mulf %164, %164 : vector<8x32xf32>
    %cst_79 = arith.constant dense<0.000000e+00> : vector<8xf32>
    %166 = vector.multi_reduction <add>, %165, %cst_79 [1] : vector<8x32xf32> to vector<8xf32>
    %167 = vector.shape_cast %166 : vector<8xf32> to vector<8x1xf32>
    %cst_80 = arith.constant 3.200000e+01 : f32
    %168 = vector.broadcast %cst_80 : f32 to vector<8x1xf32>
    %169 = arith.divf %167, %168 : vector<8x1xf32>
    %170 = vector.broadcast %162 : vector<8x1xf32> to vector<8x32xf32>
    %171 = arith.subf %156, %170 : vector<8x32xf32>
    %cst_81 = arith.constant 9.99999974E-6 : f32
    %172 = vector.broadcast %cst_81 : f32 to vector<8x1xf32>
    %173 = arith.addf %169, %172 : vector<8x1xf32>
    %174 = math.rsqrt %173 : vector<8x1xf32>
    %175 = vector.broadcast %174 : vector<8x1xf32> to vector<8x32xf32>
    %176 = arith.mulf %171, %175 : vector<8x32xf32>
    %177 = vector.broadcast %157 : vector<1x32xf32> to vector<8x32xf32>
    %178 = arith.mulf %176, %177 : vector<8x32xf32>
    %179 = vector.broadcast %158 : vector<1x32xf32> to vector<8x32xf32>
    %180 = arith.addf %178, %179 : vector<8x32xf32>
    %c0_82 = arith.constant 0 : index
    %c0_83 = arith.constant 0 : index
    %c0_84 = arith.constant 0 : index
    %181 = vector.load %arg16[%c0_82, %c0_83, %c0_84] : memref<1x8x32xf32, #tpu.memory_space<vmem>>, vector<1x8x32xf32>
    %182 = vector.shape_cast %181 : vector<1x8x32xf32> to vector<8x32xf32>
    %183 = vector.shape_cast %180 : vector<8x32xf32> to vector<1x8x32xf32>
    tpu.vector_store %arg16[%c0_82, %c0_83, %c0_84], %183 {strides = array<i32>} : memref<1x8x32xf32, #tpu.memory_space<vmem>>, vector<1x8x32xf32>,
    return
  }
  func.func @transform_0(%arg0: i32) -> (i32, i32, i32) {
    %c0_i32 = arith.constant 0 : i32
    %c0_i32_0 = arith.constant 0 : i32
    %c0_i32_1 = arith.constant 0 : i32
    return %arg0, %c0_i32, %c0_i32_0 : i32, i32, i32
  }
  func.func @transform_1(%arg0: i32) -> (i32, i32, i32) {
    %c0_i32 = arith.constant 0 : i32
    %c0_i32_0 = arith.constant 0 : i32
    %c0_i32_1 = arith.constant 0 : i32
    return %arg0, %c0_i32, %c0_i32_0 : i32, i32, i32
  }
  func.func @transform_2(%arg0: i32) -> (i32, i32) {
    %c0_i32 = arith.constant 0 : i32
    %c0_i32_0 = arith.constant 0 : i32
    %c0_i32_1 = arith.constant 0 : i32
    return %c0_i32, %c0_i32_0 : i32, i32
  }
  func.func @transform_3(%arg0: i32) -> (i32, i32) {
    %c0_i32 = arith.constant 0 : i32
    %c0_i32_0 = arith.constant 0 : i32
    %c0_i32_1 = arith.constant 0 : i32
    return %c0_i32, %c0_i32_0 : i32, i32
  }
  func.func @transform_4(%arg0: i32) -> (i32, i32, i32) {
    %c0_i32 = arith.constant 0 : i32
    %c0_i32_0 = arith.constant 0 : i32
    %c0_i32_1 = arith.constant 0 : i32
    %c0_i32_2 = arith.constant 0 : i32
    return %c0_i32, %c0_i32_0, %c0_i32_1 : i32, i32, i32
  }
  func.func @transform_5(%arg0: i32) -> (i32, i32) {
    %c0_i32 = arith.constant 0 : i32
    %c0_i32_0 = arith.constant 0 : i32
    %c0_i32_1 = arith.constant 0 : i32
    return %c0_i32, %c0_i32_0 : i32, i32
  }
  func.func @transform_6(%arg0: i32) -> (i32, i32) {
    %c0_i32 = arith.constant 0 : i32
    %c0_i32_0 = arith.constant 0 : i32
    %c0_i32_1 = arith.constant 0 : i32
    return %c0_i32, %c0_i32_0 : i32, i32
  }
  func.func @transform_7(%arg0: i32) -> (i32, i32) {
    %c0_i32 = arith.constant 0 : i32
    %c0_i32_0 = arith.constant 0 : i32
    %c0_i32_1 = arith.constant 0 : i32
    return %c0_i32, %c0_i32_0 : i32, i32
  }
  func.func @transform_8(%arg0: i32) -> (i32, i32) {
    %c0_i32 = arith.constant 0 : i32
    %c0_i32_0 = arith.constant 0 : i32
    %c0_i32_1 = arith.constant 0 : i32
    return %c0_i32, %c0_i32_0 : i32, i32
  }
  func.func @transform_9(%arg0: i32) -> (i32, i32) {
    %c0_i32 = arith.constant 0 : i32
    %c0_i32_0 = arith.constant 0 : i32
    %c0_i32_1 = arith.constant 0 : i32
    return %c0_i32, %c0_i32_0 : i32, i32
  }
  func.func @transform_10(%arg0: i32) -> (i32, i32) {
    %c0_i32 = arith.constant 0 : i32
    %c0_i32_0 = arith.constant 0 : i32
    %c0_i32_1 = arith.constant 0 : i32
    return %c0_i32, %c0_i32_0 : i32, i32
  }
  func.func @transform_11(%arg0: i32) -> (i32, i32) {
    %c0_i32 = arith.constant 0 : i32
    %c0_i32_0 = arith.constant 0 : i32
    %c0_i32_1 = arith.constant 0 : i32
    return %c0_i32, %c0_i32_0 : i32, i32
  }
  func.func @transform_12(%arg0: i32) -> (i32, i32) {
    %c0_i32 = arith.constant 0 : i32
    %c0_i32_0 = arith.constant 0 : i32
    %c0_i32_1 = arith.constant 0 : i32
    return %c0_i32, %c0_i32_0 : i32, i32
  }
  func.func @transform_13(%arg0: i32) -> (i32, i32) {
    %c0_i32 = arith.constant 0 : i32
    %c0_i32_0 = arith.constant 0 : i32
    %c0_i32_1 = arith.constant 0 : i32
    return %c0_i32, %c0_i32_0 : i32, i32
  }
  func.func @transform_14(%arg0: i32) -> (i32, i32) {
    %c0_i32 = arith.constant 0 : i32
    %c0_i32_0 = arith.constant 0 : i32
    %c0_i32_1 = arith.constant 0 : i32
    return %c0_i32, %c0_i32_0 : i32, i32
  }
  func.func @transform_15(%arg0: i32) -> (i32, i32, i32) {
    %c0_i32 = arith.constant 0 : i32
    %c0_i32_0 = arith.constant 0 : i32
    %c0_i32_1 = arith.constant 0 : i32
    return %arg0, %c0_i32, %c0_i32_0 : i32, i32, i32
  }
}

</mosaic_0001>

<bundles_post_ra>
// kernel: tpu_custom_call.1
= control target key start
LH: loop header
LB: loop body
LE: loop exit
PB: predicated region body
PF: predicated region fallthrough
CT: control target
= control target key end

     0   :  { %s1972_s0 = inlined_call_operand.hbm [shape: f32[2,1,8], index: 0, kind: input, shape index: {}]   ;;  %s1973_s1 = inlined_call_operand.hbm [shape: f32[2,8,32], index: 1, kind: input, shape index: {}]   ;;  %s1974_s2 = inlined_call_operand.vmem [shape: f32[32,96], index: 2, kind: input, shape index: {}]   ;;  %s1975_s3 = inlined_call_operand.vmem [shape: f32[1,96], index: 3, kind: input, shape index: {}]   ;;  %s1976_s4 = inlined_call_operand.vmem [shape: f32[4,8,32], index: 4, kind: input, shape index: {}]   ;;  %s1977_s5 = inlined_call_operand.vmem [shape: f32[1,32], index: 5, kind: input, shape index: {}]   ;;  %s1978_s6 = inlined_call_operand.vmem [shape: f32[1,32], index: 6, kind: input, shape index: {}]   ;;  %s1979_s7 = inlined_call_operand.vmem [shape: f32[1,32], index: 7, kind: input, shape index: {}]   ;;  %s1980_s8 = inlined_call_operand.vmem [shape: f32[1,32], index: 8, kind: input, shape index: {}]   ;;  %s1981_s9 = inlined_call_operand.vmem [shape: f32[32,64], index: 9, kind: input, shape index: {}]   ;;  %s1982_s10 = inlined_call_operand.vmem [shape: f32[1,64], index: 10, kind: input, shape index: {}]   ;;  %s1983_s11 = inlined_call_operand.vmem [shape: f32[64,32], index: 11, kind: input, shape index: {}]   ;;  %s1984_s12 = inlined_call_operand.vmem [shape: f32[1,32], index: 12, kind: input, shape index: {}]   ;;  %s1985_s13 = inlined_call_operand.vmem [shape: f32[1,32], index: 13, kind: input, shape index: {}]   ;;  %s1986_s14 = inlined_call_operand.vmem [shape: f32[1,32], index: 14, kind: input, shape index: {}]   ;;  %s1987_s15 = inlined_call_operand.hbm [shape: f32[2,8,32], index: 15, kind: output, shape index: {}]  }
   0x1   :  { %1998 = sst [smem:[#allocation19_spill]] %s1972_s0 }
   0x2   :  { %1999 = sst [smem:[#allocation20_spill]] %s1985_s13 }
   0x3   :  { %2000 = sst [smem:[#allocation21_spill]] %s1986_s14 }
   0x4   :  { %2001 = sst [smem:[#allocation22_spill]] %s1987_s15 }
   0x5   :  { %20 = vsyncpa [#allocation3], 0 }
   0x6   :  { %22 = vsyncpa [#allocation3 + $0x1], 0 }
   0x7   :  { %23 = vsyncpa [#allocation6], 0 }
   0x8   :  { %25 = vsyncpa [#allocation6 + $0x1], 0 }
   0x9   :  { %26 = vsyncpa [#allocation4], 0 }
   0xa   :  { %28 = vsyncpa [#allocation4 + $0x1], 0  ;;  %s1644_s18 = smov 0   ;;  %s1646_s19 = smov 0  }
   0xb   :  { %s1648_s20 = smov 0   ;;  %s1650_s21 = smov 0  }
   0xc LB: > { %2002 = sst [smem:[#allocation11_spill]] %s1538_s18  ;;  %s1665_s22 = sadd.s32 4294967295, %s1550_s21   ;;  %s1550_s21 = sphi %s1650_s21, %s2026_s21   ;;  %s1546_s20 = sphi %s1648_s20, %s2028_s20   ;;  %s1542_s19 = sphi %s1646_s19, %s2030_s19   ;;  %s1538_s18 = sphi %s1644_s18, %s2029_s18  }
   0xd   : > { %2003 = sst [smem:[#allocation12_spill]] %s1546_s20  ;;  %s1287_s23 = sadd.s32 4294967294, %s1550_s21  }
   0xe   : > { %2004 = sst [smem:[#allocation13_spill]] %s1550_s21  ;;  %s1669_s24 = sadd.s32 1, %s1550_s21  }
   0xf   : > { %2005 = sst [smem:[#allocation14_spill]] %s1665_s22  ;;  %s41_s25 = sadd.s32 1, %s1546_s20 }
  0x10   : > { %2006 = sst [smem:[#allocation15_spill]] %s1669_s24  ;;  %s38_s26 = ssub.s32 %s1550_s21, %s1669_s24 }
  0x11   : > { %p48_p0 = scmp.ne.s32.totalorder %s1546_s20, %s1542_s19  ;;  %p39_p1 = scmp.eq.s32.totalorder %s38_s26, 0 }
  0x12   : > { %p49_p2 = scmp.eq.s32.totalorder %s1550_s21, 0  ;;  %p54_p3 = scmp.ne.s32.totalorder %s1542_s19, %s1538_s18 }
  0x13   : > { %p55_p4 = scmp.eq.s32.totalorder %s1665_s22, 0  ;;  %p377_p7 = scmp.eq.s32.totalorder %s1665_s22, 1 }
  0x14   : > { %s1681_s27 = scalar_select %p39_p1, %s1546_s20, %s41_s25  }
  0x15   : > { %p1683_p5 = por %p49_p2, %p48_p0  ;;  %p1687_p6 = por %p55_p4, %p54_p3 }
  0x16   : > { %2007 = sst [smem:[#allocation16_spill]] %s1681_s27  ;;  %p383_p8 = scmp.eq.s32.totalorder %s1287_s23, 1 }
  0x17   : > { %p1339_p10 = scmp.lt.s32.totalorder %s1550_s21, 2  ;;  %p1694_p11 = por %p377_p7, %p48_p0 }
  0x18   : > { %p1698_p12 = por %p383_p8, %p54_p3  ;;  %s1703_s17 = sand.u32 1, %s1546_s20  }
  0x19   : > { %s2010_s30 = scalar_select %p1694_p11, 1, 0 }
  0x1a   : > { %s2012_s16 = scalar_select %p1698_p12, 1, 0 }
  0x1b   : > { %2011 = sst [smem:[#allocation17_spill]] %s2010_s30  ;;  %s445_s24 = scalar_lea.vmem [#allocation2], %s1703_s17 }
  0x1c   : > { %2013 = sst [smem:[#allocation18_spill]] %s2012_s16  ;;  %s452_s18 = sshll.u32 %s445_s24, 4  ;;  %s453_s18 = int_to_ptr.vmem [resolvable:$true] %s452_s18 }
  0x1d   : > { %s2014_s0 = sld [smem:[#allocation19_spill]]  ;;  %p1712_p13 = pnand %p1339_p10, %p1683_p5 }
  0x1e   : > { %p1292_p0 = scmp.ge.s32.totalorder %s1550_s21, 1  ;;  %p476_p1 = scmp.lt.s32.totalorder %s1550_s21, 3 }
  0x1f   : > { %s1290_s20 = sshll.u32 %s1703_s17, 3  ;;  %s443_s25 = scalar_lea.sflag [#allocation3], %s1703_s17 }
  0x20   : > { %p1424_p3 = pneg %p1712_p13 }
  0x23   : > { %s448_s27 = scalar_lea.hbm %s2014_s0, %s1550_s21  ;;  %s1427_s28 = scalar_lea.hbm %s2014_s0, 2 }
  0x24   : > { %s450_s23 = sshll.u32 %s448_s27, 4  ;;  %s451_s23 = int_to_ptr.hbm [resolvable:$true] %s450_s23 }
  0x25   : > { %s1420_s26 = sshra.s32 %s451_s23, 4  ;;  %s1421_s26 = int_to_ptr.hbm [resolvable:$true] %s1420_s26 }
  0x26   : > { %s1422_s16 = scalar_lea.hbm %s1421_s26, 1  ;;  %p1428_p5 = scmp.lt.s32.totalorder %s1421_s26, %s2014_s0 }
  0x27   : > { %p1423_p2 = scmp.ne.s32.totalorder %s1421_s26, %s1422_s16  ;;  %p1429_p8 = scmp.lt.s32.totalorder %s1427_s28, %s1422_s16 }
  0x29   : > { %p1425_p4 = pnand %p1424_p3, %p1423_p2  ;;  %p1430_p10 = por %p1429_p8, %p1428_p5 }
  0x2b   : > { %p1426_p7 = pneg %p1425_p4 }
  0x2d   : > { %p1431_p9 = pnand %p1430_p10, %p1426_p7 }
  0x2f   : > { %1434 = shalt.err (!%p1431_p9)
}
  0x30   : > { %1331 = dma.hbm_to_vmem [thread:$0]  (!%p1712_p13), %s451_s23, 16, %s453_s18, %s443_s25  }
  0x31   : > { %p1737_p2 = pnand %p1292_p0, %p476_p1  ;;  %s1291_s15 = sshll.u32 %s1550_s21, 3 }
  0x32   : > { %s463_s30 = scalar_lea.vmem [#allocation5], %s1290_s20  ;;  %s467_s28 = scalar_lea.hbm %s1973_s1, %s1291_s15 }
  0x33   : > { %s471_s16 = sshll.u32 %s463_s30, 4  ;;  %s469_s0 = sshll.u32 %s467_s28, 4  ;;  %s472_s16 = int_to_ptr.vmem [resolvable:$true] %s471_s16  ;;  %s470_s0 = int_to_ptr.hbm [resolvable:$true] %s469_s0 }
  0x34   : > { %s460_s13 = scalar_lea.sflag [#allocation6], %s1703_s17  ;;  %s1450_s22 = sshra.s32 %s470_s0, 4  ;;  %s1451_s22 = int_to_ptr.hbm [resolvable:$true] %s1450_s22 }
  0x35   : > { %s1452_s18 = scalar_lea.hbm %s1451_s22, 8  ;;  %s1457_s20 = scalar_lea.hbm %s1973_s1, 16 }
  0x36   : > { %p1453_p9 = scmp.ne.s32.totalorder %s1451_s22, %s1452_s18  ;;  %p1458_p4 = scmp.lt.s32.totalorder %s1451_s22, %s1973_s1 }
  0x37   : > { %p1459_p7 = scmp.lt.s32.totalorder %s1457_s20, %s1452_s18 }
  0x38   : > { %p1455_p0 = pnand %p1453_p9, %p1424_p3 }
  0x39   : > { %p1460_p5 = por %p1459_p7, %p1458_p4 }
  0x3a   : > { %p1456_p1 = pneg %p1455_p0 }
  0x3c   : > { %p1461_p8 = pnand %p1460_p5, %p1456_p1 }
  0x3e   : > { %1464 = shalt.err (!%p1461_p8)
}
  0x3f   : > { %1334 = dma.hbm_to_vmem [thread:$0]  (!%p1712_p13), %s470_s0, 128, %s472_s16, %s460_s13  }
  0x40   : > { %480 = sbr.rel (%p1737_p2) target bundleno = 2362 (0x93a), region = 80  ;;  %s1760_s17 = sand.u32 (!%p1737_p2), 1, %s1542_s19  }
  0x41   : > { %s483_s15 = scalar_lea.sflag (!%p1737_p2), [#allocation3], %s1760_s17  ;;  %s485_s26 = scalar_lea.vmem (!%p1737_p2), [#allocation2], %s1760_s17 }
  0x45   : > { %1525 = dma.done.wait (%p1687_p6), %s483_s15, 16  }
  0x46   : > { %1527 = vsyncadd (%p1687_p6), %s483_s15, 4294967280  ;;  %s1293_s0 = sshll.u32 %s1760_s17, 3  ;;  %s492_s13 = scalar_lea.sflag [#allocation6], %s1760_s17 }
  0x47   : > { %s495_s14 = scalar_lea.vmem [#allocation5], %s1293_s0 }
  0x48   : > { %1529 = dma.done.wait (%p1687_p6), %s492_s13, 128  }
  0x49   : > { %1531 = vsyncadd (%p1687_p6), %s492_s13, 4294967168  ;;  %v551_v0 = vld [vmem:[%s1974_s2 + $0x18] sm:$0xff]  ;;  %v550_v1 = vld [vmem:[%s1974_s2 + $0x10] sm:$0xff]  ;;  %vm556_vm0 = vcmask 261120   ;;  %s1552_s20 = smov 88   ;;  %s1553_s30 = smov 96  }
  0x4a   : > { %572 = vmatpush.msra.mxu0 %v551_v0  ;;  %v549_v2 = vld [vmem:[%s1974_s2 + $0x8] sm:$0xff]  ;;  %v548_v3 = vld [vmem:[%s1974_s2] sm:$0xff]  ;;  %s1554_s15 = smov 120   ;;  %s1555_s13 = smov 72   ;;  %vm586_vm1 = vcmask 64512  }
  0x4b   : > { %v1788_v4 = vld [vmem:[%s495_s14] sm:$0xff]  ;;  %v1385_v5 = vld [vmem:[%s1975_s3] ss:$0 sm:$0xff]  ;;  %s1556_s14 = smov 104   ;;  %s1557_s21 = smov 80  }
  0x4c   : > { %573 = vmatpush.msra.mxu0 %v550_v1  ;;  %v666_v8 = vld [vmem:[%s1976_s4] sm:$0xff]  ;;  %s1558_s16 = smov 56   ;;  %s1560_s27 = smov 112  }
  0x4d   : > { %790 = vmatpush.msra.mxu3 %v666_v8  ;;  %v580_v15 = vld [vmem:[%s485_s26] sm:$0x1]  ;;  %s1559_s26 = smov 64   ;;  %s1561_s28 = smov 40  }
  0x4e   : > { %574 = vmatpush.msra.mxu0 %v549_v2  ;;  %v1296_v16 = vadd.f32 -1.0, %v580_v15  ;;  %s1562_s18 = smov 48   ;;  %s2017_s24 = sld [smem:[#allocation14_spill]] }
  0x4f   : > { %s2019_s29 = sld [smem:[#allocation22_spill]] }
  0x50   : > { %575 = vmatpush.msra.mxu0 %v548_v3  ;;  %v582_v17 = vmul.f32 1e+09, %v1296_v16 }
  0x51   : > { %1295 = vmatmul.msk.f32.vlgmr.msra.gmra.mxu0 %vm556_vm0, %v1788_v4 }
  0x52   : > { %v1817_v18 = vperm.slane %v582_v17, 0 }
  0xce   : > { %v577_v6 = vpop.f32.mrf.mxu0 }
  0xcf   : > { %v1795_v7 = vadd.f32 %v1385_v5, %v577_v6 }
  0xd1   : > { %669 = vrot.lane.b32.xlu2 %v1795_v7, %s1552_s20  ;;  %584 = vrot.lane.b32.xlu0 %v1795_v7, %s1553_s30 }
  0xd9   : > { %667 = vrot.lane.b32.xlu2 %v1795_v7, %s1554_s15 }
  0xe1   : > { %903 = vrot.lane.b32.xlu2 %v1795_v7, %s1555_s13  ;;  %s2021_s13 = sld [smem:[#allocation21_spill]] }
  0xe9   : > { %901 = vrot.lane.b32.xlu2 %v1795_v7, %s1556_s14  ;;  %s546_s14 = scalar_lea.vmem [#allocation7], %s1293_s0  ;;  %s1500_s0 = scalar_lea.hbm %s2019_s29, 16 }
  0xf1   : > { %797 = vrot.lane.b32.xlu2 %v1795_v7, %s1557_s21  ;;  %s1195_s21 = sshll.u32 %s546_s14, 4  ;;  %s1196_s21 = int_to_ptr.vmem [resolvable:$true] %s1195_s21 }
 0x12b   : > { %v670_v9 = vpop.permute.xlu2 %669 }
 0x12c   : > { %1300 = vmatpush.xpose.msk.msrb.mxu0 %vm586_vm1, %v670_v9 }
 0x133   : > { %v668_v10 = vpop.permute.xlu2 %667 }
 0x134   : > { %1301 = vmatmul.msk.f32.vlgmr.msrb.gmra.mxu0 %vm586_vm1, %v668_v10 }
 0x13b   : > { %v904_v11 = vpop.permute.xlu2 %903 }
 0x13c   : > { %1311 = vmatpush.xpose.msk.msrb.mxu3 %vm586_vm1, %v904_v11 }
 0x143   : > { %v1809_v12 = vpop.permute.xlu2 %901  ;;  %v585_v13 = vpop.permute.xlu0 %584 }
 0x144   : > { %1297 = vmatpush.xpose.msk.msra.mxu1 %vm586_vm1, %v585_v13 }
 0x147   : > { %1298 = vmatmul.msk.f32.vlgmr.msra.gmra.mxu1 %vm586_vm1, %v1795_v7 }
 0x14b   : > { %v798_v14 = vpop.permute.xlu2 %797 }
 0x14c   : > { %1306 = vmatpush.xpose.msk.msra.mxu0 %vm586_vm1, %v798_v14 }
 0x1b1   : > { %v692_v19 = vpop.f32.mrf.mxu0 }
 0x1b2   : > { %v695_v20 = vmul.f32 0.35355338, %v692_v19 }
 0x1b4   : > { %v696_v21 = vadd.f32 %v695_v20, %v1817_v18 }
 0x1b6   : > { %v697_v22 = vsel %vm586_vm1, %v696_v21, -inf }
 0x1b7   : > { %698 = vmax.xlane.f32.xlu2 %v697_v22 }
 0x1c4   : > { %v608_v23 = vpop.f32.mrf.mxu1 }
 0x1c5   : > { %v611_v24 = vmul.f32 0.35355338, %v608_v23 }
 0x1c7   : > { %v615_v25 = vadd.f32 %v1817_v18, %v611_v24 }
 0x1c9   : > { %v616_v26 = vsel %vm586_vm1, %v615_v25, -inf }
 0x1ca   : > { %617 = vmax.xlane.f32.xlu0 %v616_v26  ;;  %v1303_v26 = vld [vmem:[%s1976_s4 + $0x8] sm:$0xff] }
 0x1cb   : > { %767 = vmatpush.msrb.mxu1 %v1303_v26 }
 0x1cf   : > { %721 = vrot.lane.b32.xlu2 %v1795_v7, %s1558_s16  ;;  %s1319_s16 = sshll.u32 %s2017_s24, 3  ;;  %s1183_s24 = scalar_lea.sflag [#allocation4], %s1760_s17 }
 0x1d0   : > { %s1193_s25 = scalar_lea.hbm %s2019_s29, %s1319_s16 }
 0x1d1   : > { %s1197_s22 = sshll.u32 %s1193_s25, 4  ;;  %s1198_s22 = int_to_ptr.hbm [resolvable:$true] %s1197_s22 }
 0x22a   : > { %v699_v39 = vpop.xlane.xlu2 %698 }
 0x22b   : > { %v700_v54 = vsub.f32 %v696_v21, %v699_v39 }
 0x22d   : > { %v701_v56 = vmul.f32 1.442695, %v700_v54 }
 0x232   : > { %v722_v46 = vpop.permute.xlu2 %721 }
 0x23d   : > { %v618_v27 = vpop.xlane.xlu0 %617 }
 0x23e   : > { %v619_v28 = vsub.f32 %v615_v25, %v618_v27 }
 0x240   : > { %v620_v29 = vmul.f32 1.442695, %v619_v28 }
 0x242   : > { %1394 = vpow2.f32 %v620_v29 }
 0x248   : > { %v1395_v30 = vpop.eup %1394 }
 0x249   : > { %v622_v31 = vsel %vm586_vm1, %v1395_v30, 0.0 }
 0x24a   : > { %623 = vadd.xlane.f32.xlu1 %v622_v31 }
 0x263   : > { %640 = vrot.lane.b32.xlu1 %v1795_v7, %s1559_s26  ;;  %s1494_s26 = sshra.s32 %s1198_s22, 4  ;;  %s1495_s26 = int_to_ptr.hbm [resolvable:$true] %s1494_s26 }
 0x264   : > { %s1496_s16 = scalar_lea.hbm %s1495_s26, 8  ;;  %p1501_p10 = scmp.lt.s32.totalorder %s1495_s26, %s2019_s29 }
 0x265   : > { %p1497_p6 = scmp.ne.s32.totalorder %s1495_s26, %s1496_s16  ;;  %p1502_p2 = scmp.lt.s32.totalorder %s1500_s0, %s1496_s16 }
 0x267   : > { %p1498_p13 = pnand %p1497_p6, %p1694_p11  ;;  %p1503_p9 = por %p1502_p2, %p1501_p10 }
 0x269   : > { %p1499_p3 = pneg %p1498_p13 }
 0x26b   : > { %795 = vrot.lane.b32.xlu1 %v1795_v7, %s1560_s27  ;;  %p1504_p0 = pnand %p1503_p9, %p1499_p3 }
 0x2bd   : > { %v624_v32 = vpop.xlane.xlu1 %623 }
 0x2be   : > { %1396 = vrcp.f32 %v624_v32  ;;  %v636_v38 = vand.u32 2147483648, %v624_v32  ;;  %vm630_vm3 = vweird.f32 %v624_v32  ;;  %v634_v40 = vand.u32 2147483647, %v624_v32 }
 0x2bf   : > { %1398 = vpow2.f32 %v701_v56 }
 0x2c0   : > { %v637_v42 = vor.u32 1.1754944e-38, %v636_v38  ;;  %vm635_vm5 = vcmp.eq.f32.partialorder %v634_v40, 8.507059e+37 }
 0x2c4   : > { %v1397_v33 = vpop.eup %1396 }
 0x2c5   : > { %v626_v34 = vmul.f32 %v1397_v33, %v624_v32  ;;  %vm631_vm2 = vweird.f32 %v1397_v33  ;;  %v1399_v0 = vpop.eup %1398 }
 0x2c6   : > { %vm632_vm4 = vmor %vm630_vm3, %vm631_vm2  ;;  %v703_v1 = vsel %vm586_vm1, %v1399_v0, 0.0 }
 0x2c7   : > { %v627_v35 = vsub.f32 1.0, %v626_v34 }
 0x2c9   : > { %v628_v36 = vmul.f32 %v1397_v33, %v627_v35 }
 0x2cb   : > { %v629_v37 = vadd.f32 %v1397_v33, %v628_v36 }
 0x2cd   : > { %v633_v41 = vsel %vm632_vm4, %v1397_v33, %v629_v37 }
 0x2ce   : > { %v638_v43 = vsel %vm635_vm5, %v637_v42, %v633_v41 }
 0x2cf   : > { %v639_v45 = vmul.f32 %v1395_v30, %v638_v43 }
 0x2d5   : > { %v641_v44 = vpop.permute.xlu1 %640 }
 0x2d6   : > { %661 = vmatpush.msra.mxu2 %v641_v44 }
 0x2d7   : > { %1299 = vmatmul.msk.f32.vlgmr.msra.gmra.mxu2 %vm586_vm1, %v639_v45 }
 0x2d8   : > { %742 = vmatpush.msrb.mxu2 %v722_v46 }
 0x2dd   : > { %v796_v47 = vpop.permute.xlu1 %795 }
 0x2de   : > { %1307 = vmatmul.msk.f32.vlgmr.msra.gmra.mxu0 %vm586_vm1, %v796_v47 }
 0x35a   : > { %v663_v48 = vpop.f32.mrf.mxu2 }
 0x35b   : > { %1305 = vmatmul.msk.f32.vlgmr.msra.gmra.mxu3 %vm586_vm1, %v663_v48  ;;  %v820_v49 = vpop.f32.mrf.mxu0 }
 0x35c   : > { %v823_v50 = vmul.f32 0.35355338, %v820_v49  ;;  %v1314_v49 = vld [vmem:[%s1976_s4 + $0x18] sm:$0xff] }
 0x35e   : > { %v824_v51 = vadd.f32 %v823_v50, %v1817_v18  ;;  %v1309_v50 = vld [vmem:[%s1976_s4 + $0x10] sm:$0xff] }
 0x35f   : > { %895 = vmatpush.msra.mxu1 %v1309_v50 }
 0x360   : > { %v825_v52 = vsel %vm586_vm1, %v824_v51, -inf }
 0x361   : > { %826 = vmax.xlane.f32.xlu1 %v825_v52 }
 0x363   : > { %1312 = vmatmul.msk.f32.vlgmr.msrb.gmra.mxu3 %vm586_vm1, %v1809_v12 }
 0x37a   : > { %955 = vrot.lane.b32.xlu1 %v1795_v7, %s1561_s28  ;;  %s2018_s28 = sld [smem:[#allocation20_spill]] }
 0x3d4   : > { %v827_v55 = vpop.xlane.xlu1 %826 }
 0x3d5   : > { %v828_v60 = vsub.f32 %v824_v51, %v827_v55 }
 0x3d7   : > { %v829_v63 = vmul.f32 1.442695, %v828_v60 }
 0x3d9   : > { %1400 = vpow2.f32 %v829_v63 }
 0x3de   : > { %v1835_v53 = vpop.f32.mrf.mxu3 }
 0x3df   : > { %v1840_v2 = vpop.eup %1400 }
 0x3e0   : > { %v831_v3 = vsel %vm586_vm1, %v1840_v2, 0.0 }
 0x3e6   : > { %v926_v57 = vpop.f32.mrf.mxu3 }
 0x3e7   : > { %v929_v58 = vmul.f32 0.35355338, %v926_v57 }
 0x3e9   : > { %v930_v59 = vadd.f32 %v929_v58, %v1817_v18  ;;  %v1386_v58 = vld [vmem:[%s1977_s5] ss:$0 sm:$0xff] }
 0x3eb   : > { %v931_v61 = vsel %vm586_vm1, %v930_v59, -inf }
 0x3ec   : > { %932 = vmax.xlane.f32.xlu0 %v931_v61  ;;  %v956_v62 = vpop.permute.xlu1 %955 }
 0x3ed   : > { %976 = vmatpush.msrb.mxu0 %v956_v62 }
 0x3f4   : > { %704 = vadd.xlane.f32.xlu0 %v703_v1 }
 0x3fc   : > { %832 = vadd.xlane.f32.xlu0 %v831_v3 }
 0x45f   : > { %v933_v5 = vpop.xlane.xlu0 %932 }
 0x460   : > { %v934_v6 = vsub.f32 %v930_v59, %v933_v5 }
 0x462   : > { %v935_v8 = vmul.f32 1.442695, %v934_v6 }
 0x464   : > { %1402 = vpow2.f32 %v935_v8 }
 0x467   : > { %v705_v9 = vpop.xlane.xlu0 %704 }
 0x468   : > { %1404 = vrcp.f32 %v705_v9  ;;  %v717_v15 = vand.u32 2147483648, %v705_v9  ;;  %v715_v17 = vand.u32 2147483647, %v705_v9  ;;  %vm711_vm7 = vweird.f32 %v705_v9 }
 0x46a   : > { %v1403_v10 = vpop.eup %1402  ;;  %v718_v19 = vor.u32 1.1754944e-38, %v717_v15  ;;  %vm716_vm9 = vcmp.eq.f32.partialorder %v715_v17, 8.507059e+37  ;;  %v1079_v15 = vld [vmem:[%s1981_s9] sm:$0xff] }
 0x46b   : > { %v937_v11 = vsel %vm586_vm1, %v1403_v10, 0.0 }
 0x46c   : > { %938 = vadd.xlane.f32.xlu0 %v937_v11 }
 0x46e   : > { %v1405_v12 = vpop.eup %1404 }
 0x46f   : > { %v707_v13 = vmul.f32 %v1405_v12, %v705_v9  ;;  %vm712_vm6 = vweird.f32 %v1405_v12  ;;  %v833_v23 = vpop.xlane.xlu0 %832 }
 0x470   : > { %vm713_vm8 = vmor %vm711_vm7, %vm712_vm6  ;;  %1406 = vrcp.f32 %v833_v23  ;;  %v845_v33 = vand.u32 2147483648, %v833_v23  ;;  %vm839_vm11 = vweird.f32 %v833_v23 }
 0x471   : > { %v708_v14 = vsub.f32 1.0, %v707_v13  ;;  %v1081_v13 = vld [vmem:[%s1981_s9 + $0x10] sm:$0xff] }
 0x472   : > { %v846_v39 = vor.u32 1.1754944e-38, %v845_v33 }
 0x473   : > { %v709_v16 = vmul.f32 %v1405_v12, %v708_v14  ;;  %v1080_v14 = vld [vmem:[%s1981_s9 + $0x8] sm:$0xff] }
 0x475   : > { %v710_v18 = vadd.f32 %v1405_v12, %v709_v16 }
 0x476   : > { %v1407_v24 = vpop.eup %1406 }
 0x477   : > { %v714_v20 = vsel %vm713_vm8, %v1405_v12, %v710_v18  ;;  %v835_v25 = vmul.f32 %v1407_v24, %v833_v23  ;;  %vm840_vm10 = vweird.f32 %v1407_v24  ;;  %v1082_v12 = vld [vmem:[%s1981_s9 + $0x18] sm:$0xff] }
 0x478   : > { %v719_v21 = vsel %vm716_vm9, %v718_v19, %v714_v20  ;;  %vm841_vm12 = vmor %vm839_vm11, %vm840_vm10  ;;  %vm1124_vm11 = vcmask 523264  }
 0x479   : > { %v720_v22 = vmul.f32 %v1399_v0, %v719_v21  ;;  %v836_v28 = vsub.f32 1.0, %v835_v25  ;;  %v1563_v0 = vmov 32.0   ;;  %v1387_v25 = vld [vmem:[%s1978_s6] ss:$0 sm:$0xff] }
 0x47b   : > { %1302 = vmatmul.msk.f32.vlgmr.msrb.gmra.mxu2 %vm586_vm1, %v720_v22  ;;  %v837_v29 = vmul.f32 %v1407_v24, %v836_v28  ;;  %v1388_v28 = vld [vmem:[%s1979_s7] ss:$0 sm:$0xff] }
 0x47d   : > { %v838_v32 = vadd.f32 %v1407_v24, %v837_v29 }
 0x47f   : > { %v842_v38 = vsel %vm841_vm12, %v1407_v24, %v838_v32 }
 0x480   : > { %849 = vrot.lane.b32.xlu0 %v1795_v7, %s1562_s18  ;;  %v843_v7 = vand.u32 2147483647, %v833_v23 }
 0x482   : > { %vm844_vm15 = vcmp.eq.f32.partialorder %v843_v7, 8.507059e+37  ;;  %v1118_v7 = vld [vmem:[%s1983_s11 + $0x30] sm:$0xff] }
 0x483   : > { %v847_v42 = vsel %vm844_vm15, %v846_v39, %v842_v38  ;;  %v1114_v38 = vld [vmem:[%s1983_s11 + $0x10] sm:$0xff] }
 0x484   : > { %v848_v47 = vmul.f32 %v1840_v2, %v847_v42  ;;  %v1112_v42 = vld [vmem:[%s1983_s11] sm:$0xff] }
 0x4df   : > { %v939_v27 = vpop.xlane.xlu0 %938 }
 0x4e0   : > { %1408 = vrcp.f32 %v939_v27  ;;  %v951_v35 = vand.u32 2147483648, %v939_v27  ;;  %v949_v37 = vand.u32 2147483647, %v939_v27  ;;  %vm945_vm14 = vweird.f32 %v939_v27 }
 0x4e1   : > { %1410 = vrcp.f32 %v1563_v0 }
 0x4e2   : > { %v952_v41 = vor.u32 1.1754944e-38, %v951_v35  ;;  %vm950_vm3 = vcmp.eq.f32.partialorder %v949_v37, 8.507059e+37  ;;  %v1117_v35 = vld [vmem:[%s1983_s11 + $0x28] sm:$0xff]  ;;  %v1115_v37 = vld [vmem:[%s1983_s11 + $0x18] sm:$0xff] }
 0x4e6   : > { %v1409_v30 = vpop.eup %1408 }
 0x4e7   : > { %v941_v31 = vmul.f32 %v1409_v30, %v939_v27  ;;  %vm946_vm13 = vweird.f32 %v1409_v30  ;;  %v1411_v1 = vpop.eup %1410 }
 0x4e8   : > { %vm947_vm2 = vmor %vm945_vm14, %vm946_vm13  ;;  %v1019_v2 = vmul.f32 32.0, %v1411_v1 }
 0x4e9   : > { %v942_v34 = vsub.f32 1.0, %v941_v31 }
 0x4ea   : > { %v1020_v3 = vsub.f32 1.0, %v1019_v2 }
 0x4eb   : > { %v943_v36 = vmul.f32 %v1409_v30, %v942_v34  ;;  %v1119_v34 = vld [vmem:[%s1983_s11 + $0x38] sm:$0xff] }
 0x4ec   : > { %1136 = vmatpush.msra.mxu3 %v1119_v34 }
 0x4ed   : > { %v944_v40 = vadd.f32 %v1409_v30, %v943_v36  ;;  %v1116_v36 = vld [vmem:[%s1983_s11 + $0x20] sm:$0xff] }
 0x4ee   : > { %1137 = vmatpush.msra.mxu3 %v1118_v7 }
 0x4ef   : > { %v948_v43 = vsel %vm947_vm2, %v1409_v30, %v944_v40  ;;  %v1389_v30 = vld [vmem:[%s1980_s8] ss:$0 sm:$0xff]  ;;  %v1113_v40 = vld [vmem:[%s1983_s11 + $0x8] sm:$0xff] }
 0x4f0   : > { %v953_v44 = vsel %vm950_vm3, %v952_v41, %v948_v43  ;;  %1138 = vmatpush.msra.mxu3 %v1117_v35 }
 0x4f1   : > { %v954_v45 = vmul.f32 %v1403_v10, %v953_v44 }
 0x4f2   : > { %v850_v46 = vpop.permute.xlu0 %849  ;;  %1139 = vmatpush.msra.mxu3 %v1116_v36 }
 0x4f3   : > { %870 = vmatpush.msra.mxu2 %v850_v46  ;;  %1313 = vmatmul.msk.f32.vlgmr.msrb.gmra.mxu0 %vm586_vm1, %v954_v45 }
 0x4f4   : > { %1308 = vmatmul.msk.f32.vlgmr.msra.gmra.mxu2 %vm586_vm1, %v848_v47  ;;  %1140 = vmatpush.msra.mxu3 %v1115_v37 }
 0x4f5   : > { %1001 = vmatpush.msrb.mxu2 %v1314_v49 }
 0x4f6   : > { %1141 = vmatpush.msra.mxu3 %v1114_v38 }
 0x4f8   : > { %1142 = vmatpush.msra.mxu3 %v1113_v40 }
 0x4fa   : > { %1143 = vmatpush.msra.mxu3 %v1112_v42 }
 0x4fe   : > { %v744_v48 = vpop.f32.mrf.mxu2 }
 0x4ff   : > { %1304 = vmatmul.msk.f32.vlgmr.msrb.gmra.mxu1 %vm586_vm1, %v744_v48 }
 0x500   : > { %1102 = vmatpush.msrb.mxu1 %v1082_v12 }
 0x502   : > { %1103 = vmatpush.msrb.mxu1 %v1081_v13 }
 0x504   : > { %1104 = vmatpush.msrb.mxu1 %v1080_v14 }
 0x506   : > { %1105 = vmatpush.msrb.mxu1 %v1079_v15 }
 0x570   : > { %v978_v51 = vpop.f32.mrf.mxu0 }
 0x571   : > { %1315 = vmatmul.msk.f32.vlgmr.msrb.gmra.mxu2 %vm586_vm1, %v978_v51 }
 0x577   : > { %v872_v52 = vpop.f32.mrf.mxu2 }
 0x578   : > { %1310 = vmatmul.msk.f32.vlgmr.msra.gmra.mxu1 %vm586_vm1, %v872_v52  ;;  %vm1023_vm1 = vweird.f32 %v1411_v1  ;;  %v1390_v52 = vld [vmem:[%s1982_s10] ss:$0 sm:$0xff] }
 0x57c   : > { %v769_v54 = vpop.f32.mrf.mxu1 }
 0x57d   : > { %v793_v55 = vadd.f32 %v1835_v53, %v769_v54  ;;  %v1021_v53 = vmul.f32 %v1411_v1, %v1020_v3 }
 0x57f   : > { %v1022_v5 = vadd.f32 %v1411_v1, %v1021_v53 }
 0x581   : > { %v1868_v6 = vsel %vm1023_vm1, %v1411_v1, %v1022_v5 }
 0x5f4   : > { %v1003_v59 = vpop.f32.mrf.mxu2 }
 0x5f5   : > { %v897_v56 = vpop.f32.mrf.mxu1 }
 0x5f6   : > { %v900_v57 = vadd.f32 %v897_v56, %v793_v55 }
 0x5f8   : > { %v1006_v60 = vadd.f32 %v1003_v59, %v900_v57 }
 0x5fa   : > { %v1011_v61 = vadd.f32 %v1386_v58, %v1006_v60 }
 0x5fc   : > { %v1012_v62 = vadd.f32 %v1011_v61, %v1788_v4 }
 0x5fe   : > { %v1015_v63 = vsel %vm556_vm0, %v1012_v62, 0.0 }
 0x5ff   : > { %1016 = vadd.xlane.f32.xlu0 %v1015_v63 }
 0x672   : > { %v1017_v8 = vpop.xlane.xlu0 %1016 }
 0x673   : > { %v1025_v9 = vmul.f32 %v1868_v6, %v1017_v8 }
 0x675   : > { %v1026_v10 = vsub.f32 %v1012_v62, %v1025_v9  ;;  %v1391_v62 = vld [vmem:[%s1984_s12] ss:$0 sm:$0xff] }
 0x677   : > { %v1027_v11 = vmul.f32 %v1026_v10, %v1026_v10 }
 0x679   : > { %v1028_v4 = vsel %vm556_vm0, %v1027_v11, 0.0 }
 0x67a   : > { %1029 = vadd.xlane.f32.xlu2 %v1028_v4 }
 0x6ed   : > { %v1030_v16 = vpop.xlane.xlu2 %1029 }
 0x6ee   : > { %v1031_v17 = vmul.f32 %v1030_v16, %v1868_v6 }
 0x6f0   : > { %v1032_v18 = vadd.f32 1e-05, %v1031_v17 }
 0x6f2   : > { %1412 = vrsqrt.f32 %v1032_v18  ;;  %vm1039_vm5 = vweird.f32 %v1032_v18 }
 0x6f8   : > { %v1413_v19 = vpop.eup %1412 }
 0x6f9   : > { %v1034_v20 = vmul.f32 %v1413_v19, %v1032_v18  ;;  %vm1040_vm4 = vweird.f32 %v1413_v19  ;;  %v1392_v18 = vld [vmem:[%s2018_s28] ss:$0 sm:$0xff] }
 0x6fa   : > { %vm1041_vm6 = vmor %vm1039_vm5, %vm1040_vm4 }
 0x6fb   : > { %v1035_v21 = vmul.f32 %v1413_v19, %v1034_v20  ;;  %v1393_v20 = vld [vmem:[%s2021_s13] ss:$0 sm:$0xff] }
 0x6fd   : > { %v1036_v22 = vmul.f32 0.5, %v1035_v21 }
 0x6ff   : > { %v1037_v23 = vsub.f32 1.5, %v1036_v22 }
 0x701   : > { %v1038_v24 = vmul.f32 %v1413_v19, %v1037_v23 }
 0x703   : > { %v1042_v26 = vsel %vm1041_vm6, %v1413_v19, %v1038_v24 }
 0x704   : > { %v1043_v27 = vmul.f32 %v1042_v26, %v1026_v10 }
 0x706   : > { %v1047_v29 = vmul.f32 %v1387_v25, %v1043_v27 }
 0x708   : > { %v1051_v31 = vadd.f32 %v1388_v28, %v1047_v29 }
 0x70a   : > { %1316 = vmatmul.msk.f32.vlgmr.msrb.gmra.mxu1 %vm556_vm0, %v1051_v31  ;;  %v1056_v32 = vmul.f32 %v1389_v30, %v1051_v31 }
 0x70c   : > { %v1057_v33 = vsel %vm556_vm0, %v1056_v32, 0.0 }
 0x70d   : > { %1058 = vadd.xlane.f32.xlu1 %v1057_v33 }
 0x780   : > { %v1059_v39 = vpop.xlane.xlu1 %1058 }
 0x781   : > { %v1060_v41 = vsub.f32 0.0, %v1059_v39 }
 0x783   : > { %v1061_v43 = vmul.f32 1.442695, %v1060_v41 }
 0x785   : > { %1414 = vpow2.f32 %v1061_v43 }
 0x787   : > { %v1107_v54 = vpop.f32.mrf.mxu1 }
 0x788   : > { %v1108_v58 = vadd.f32 %v1390_v52, %v1107_v54 }
 0x78b   : > { %v1415_v44 = vpop.eup %1414 }
 0x78c   : > { %v1063_v45 = vadd.f32 1.0, %v1415_v44 }
 0x78e   : > { %1416 = vrcp.f32 %v1063_v45  ;;  %v1075_v49 = vand.u32 2147483648, %v1063_v45  ;;  %v1073_v51 = vand.u32 2147483647, %v1063_v45  ;;  %vm1069_vm8 = vweird.f32 %v1063_v45 }
 0x790   : > { %v1076_v56 = vor.u32 1.1754944e-38, %v1075_v49  ;;  %vm1074_vm10 = vcmp.eq.f32.partialorder %v1073_v51, 8.507059e+37 }
 0x794   : > { %v1417_v46 = vpop.eup %1416 }
 0x795   : > { %v1065_v47 = vmul.f32 %v1417_v46, %v1063_v45  ;;  %vm1070_vm7 = vweird.f32 %v1417_v46 }
 0x796   : > { %vm1071_vm9 = vmor %vm1069_vm8, %vm1070_vm7 }
 0x797   : > { %v1066_v48 = vsub.f32 1.0, %v1065_v47 }
 0x799   : > { %v1067_v50 = vmul.f32 %v1417_v46, %v1066_v48 }
 0x79b   : > { %v1068_v55 = vadd.f32 %v1417_v46, %v1067_v50 }
 0x79d   : > { %v1072_v57 = vsel %vm1071_vm9, %v1417_v46, %v1068_v55 }
 0x79e   : > { %v1077_v59 = vsel %vm1074_vm10, %v1076_v56, %v1072_v57 }
 0x79f   : > { %v1110_v60 = vmul.f32 %v1108_v58, %v1077_v59 }
 0x7a1   : > { %v1111_v61 = vmax.f32 %v1110_v60, 0.0 }
 0x7a3   : > { %1317 = vmatmul.msk.f32.vlgmr.msra.gmra.mxu3 %vm1124_vm11, %v1111_v61 }
 0x826   : > { %v1145_v63 = vpop.f32.mrf.mxu3 }
 0x827   : > { %v1146_v0 = vadd.f32 %v1391_v62, %v1145_v63 }
 0x829   : > { %v1148_v1 = vadd.f32 %v1146_v0, %v1051_v31 }
 0x82b   : > { %v1151_v2 = vsel %vm556_vm0, %v1148_v1, 0.0 }
 0x82c   : > { %1152 = vadd.xlane.f32.xlu0 %v1151_v2 }
 0x89f   : > { %v1153_v3 = vpop.xlane.xlu0 %1152 }
 0x8a0   : > { %v1154_v53 = vmul.f32 %v1153_v3, %v1868_v6 }
 0x8a2   : > { %v1155_v5 = vsub.f32 %v1148_v1, %v1154_v53 }
 0x8a4   : > { %v1156_v8 = vmul.f32 %v1155_v5, %v1155_v5 }
 0x8a6   : > { %v1157_v9 = vsel %vm556_vm0, %v1156_v8, 0.0 }
 0x8a7   : > { %1158 = vadd.xlane.f32.xlu2 %v1157_v9 }
 0x91a   : > { %v1159_v10 = vpop.xlane.xlu2 %1158 }
 0x91b   : > { %v1160_v11 = vmul.f32 %v1159_v10, %v1868_v6 }
 0x91d   : > { %v1161_v4 = vadd.f32 1e-05, %v1160_v11 }
 0x91f   : > { %1418 = vrsqrt.f32 %v1161_v4  ;;  %vm1168_vm13 = vweird.f32 %v1161_v4 }
 0x925   : > { %v1419_v12 = vpop.eup %1418 }
 0x926   : > { %v1163_v13 = vmul.f32 %v1419_v12, %v1161_v4  ;;  %vm1169_vm12 = vweird.f32 %v1419_v12 }
 0x927   : > { %vm1170_vm14 = vmor %vm1168_vm13, %vm1169_vm12 }
 0x928   : > { %v1164_v14 = vmul.f32 %v1419_v12, %v1163_v13 }
 0x92a   : > { %v1165_v15 = vmul.f32 0.5, %v1164_v14 }
 0x92c   : > { %v1166_v16 = vsub.f32 1.5, %v1165_v15 }
 0x92e   : > { %v1167_v17 = vmul.f32 %v1419_v12, %v1166_v16 }
 0x930   : > { %v1171_v6 = vsel %vm1170_vm14, %v1419_v12, %v1167_v17 }
 0x931   : > { %v1172_v19 = vmul.f32 %v1171_v6, %v1155_v5 }
 0x933   : > { %v1176_v21 = vmul.f32 %v1392_v18, %v1172_v19 }
 0x935   : > { %v1180_v22 = vadd.f32 %v1393_v20, %v1176_v21 }
 0x937   : > { %1181 = vst.msk [vmem:[%s546_s14] sm:$0xff] %vm556_vm0, %v1180_v22 }
 0x938   : > { %1507 = shalt.err (!%p1504_p0)
}
 0x939   : > { %1326 = dma.vmem_to_hbm [thread:$0]  (%p1694_p11), %s1196_s21, 128, %s1198_s22, %s1183_s24  }
 0x93a PF: > { %s2022_s17 = sld [smem:[#allocation11_spill]] }
 0x93b   : > { %s2024_s30 = sld [smem:[#allocation13_spill]] }
 0x940   : > { %s1209_s15 = sand.u32 1, %s2022_s17  }
 0x941   : > { %p2025_p1 = scmp.ge.s32.totalorder %s2024_s30, 2  ;;  %s1210_s13 = scalar_lea.sflag [#allocation4], %s1209_s15 }
 0x943   : > { %p1336_p4 = pnand %p2025_p1, %p1698_p12 }
 0x945   : > { %p1337_p7 = pneg %p1336_p4 }
 0x947   : > { %1533 = dma.done.wait (%p1337_p7), %s1210_s13, 128  }
 0x948   : > { %1535 = vsyncadd (%p1337_p7), %s1210_s13, 4294967168  ;;  %s2026_s21 = sld [smem:[#allocation15_spill]]  ;;  %s2029_s18 = smov %s1542_s19 }
 0x949   : > { %s2027_s14 = sld [smem:[#allocation12_spill]] }
 0x94a   : > { %s2028_s20 = sld [smem:[#allocation16_spill]] }
 0x94e   : > { %p31_p5 = scmp.ge.s32.totalorder %s2026_s21, 4  }
 0x94f   : > { %s2030_s19 = smov %s2027_s14 }
 0x950   :  { %33 = sbr.rel (!%p31_p5) target bundleno = 12 (0xc), region = 141 }
 0x955   :  { %1216 = vsyncpa [#allocation3], 1 }
 0x956   :  { %1218 = vsyncpa [#allocation3 + $0x1], 1 }
 0x957   :  { %1219 = vsyncpa [#allocation6], 1 }
 0x958   :  { %1221 = vsyncpa [#allocation6 + $0x1], 1 }
 0x959   :  { %1222 = vsyncpa [#allocation4], 1 }
 0x95a   :  { %1224 = vsyncpa [#allocation4 + $0x1], 1 }

</bundles_post_ra>
